<compile_context>
chip_gen: v6e
topology: v6e:2x2x1
jax: 0.10.0
libtpu: 0.0.40
codegen_flags: <defaults>
</compile_context>

<pallas_src>
import jax
import jax.numpy as jnp
from jax.experimental import pallas as pl
from jax.experimental.pallas import tpu as pltpu


def _occ_encode_kernel(occ_ref, base_ref, out_ref):
    # occ_ref:  (tm, 1)  — flattened occupations column (resident across inner axis)
    # base_ref: (1, tn)  — occupation_base slice on the lane axis
    # out_ref:  (tm, tn) — rank-1 broadcast product (pure VPU multiply + store)
    out_ref[...] = occ_ref[...] * base_ref[...]


def _round_up(x: int, m: int) -> int:
    return ((x + m - 1) // m) * m


def generic_occupation_encoding(occupations: jax.Array,
                                occupation_base: jax.Array) -> jax.Array:
    """occupations: (n_sites, batch); occupation_base: (token_dim,)
    returns (n_sites, batch, token_dim) = occupations[..., None] * occupation_base."""
    n_sites, batch = occupations.shape
    token_dim = occupation_base.shape[0]
    M = n_sites * batch

    out_dtype = jnp.result_type(occupations.dtype, occupation_base.dtype)
    itemsize = jnp.dtype(out_dtype).itemsize

    # ---- token_dim tile: prefer one full (128-padded) row tile so the base row is
    # loaded exactly once and output rows are written contiguously; wide token dims
    # fall back to 2048-wide strips with a masked partial edge block.
    d_pad = _round_up(token_dim, 128)
    tn = d_pad if d_pad <= 2048 else 2048

    # ---- row tile: target ~8 MiB output tiles, capped at 4096 rows so the
    # lane-padded (tm, 1) occ buffers stay small; tm kept a multiple of 8 so
    # Pallas accepts (and masks) partial edge blocks for ragged M.
    target_tile_bytes = 8 << 20
    tm = target_tile_bytes // (tn * itemsize)
    tm = max(8, min(4096, tm))
    tm = min(tm, _round_up(M, 8))
    tm = _round_up(tm, 8)

    grid_m = pl.cdiv(M, tm)
    grid_d = pl.cdiv(token_dim, tn)
    grid = (grid_m, grid_d)  # rows OUTER: occ block resident across the inner token loop

    occ_flat = occupations.reshape(M, 1).astype(out_dtype)     # free reshape
    base_row = occupation_base.reshape(1, token_dim).astype(out_dtype)

    # ---- VMEM budget (double-buffered), incl. lane/sublane padding of inputs ----
    out_buf = 2 * tm * tn * itemsize
    occ_buf = 2 * tm * 128 * itemsize        # (tm, 1) blocks are lane-padded to 128
    base_buf = 2 * 8 * tn * itemsize         # (1, tn) blocks are sublane-padded to 8
    needed = out_buf + occ_buf + base_buf
    vmem_limit = int(min(max(2 * needed, 32 << 20), 48 << 20))  # safe on v7x (64 MiB)

    cost = pl.CostEstimate(
        flops=M * token_dim,
        transcendentals=0,
        bytes_accessed=itemsize * (M + token_dim + M * token_dim),
    )

    out_flat = pl.pallas_call(
        _occ_encode_kernel,
        out_shape=jax.ShapeDtypeStruct((M, token_dim), out_dtype),
        grid_spec=pltpu.PrefetchScalarGridSpec(
            num_scalar_prefetch=0,
            grid=grid,
            in_specs=[
                # occupations column: depends only on the OUTER row-block index, so
                # it stays VMEM-resident across the whole inner token_dim loop.
                pl.BlockSpec((tm, 1), lambda i, j: (i, 0)),
                # base row: tiny contiguous slice, re-fetched per inner step
                # (loaded exactly once in the common grid_d == 1 case).
                pl.BlockSpec((1, tn), lambda i, j: (0, j)),
            ],
            out_specs=pl.BlockSpec((tm, tn), lambda i, j: (i, j)),
        ),
        compiler_params=pltpu.CompilerParams(
            dimension_semantics=("parallel", "parallel"),
            vmem_limit_bytes=vmem_limit,
        ),
        cost_estimate=cost,
    )(occ_flat, base_row)

    return out_flat.reshape(n_sites, batch, token_dim)  # free (M == n_sites*batch)


if __name__ == "__main__":
    key = jax.random.PRNGKey(0)

    # Case 1: small shapes consistent with the module's forward.
    n_sites, batch, token_dim = 8, 2, 128
    k_occ, k_base, k2_occ, k2_base = jax.random.split(key, 4)

    occupations = jax.random.normal(k_occ, (n_sites, batch), dtype=jnp.float32)
    occupation_base = jax.random.normal(k_base, (token_dim,), dtype=jnp.float32)

    out = generic_occupation_encoding(occupations, occupation_base)
    out = jax.block_until_ready(out)

    ref = occupations[:, :, None] * occupation_base[None, None, :]
    assert out.shape == (n_sites, batch, token_dim)
    assert jnp.allclose(out, ref, atol=1e-6, rtol=1e-6)

    # Case 2: ragged shapes (exercise masked partial edge blocks: M not a multiple
    # of 8, token_dim not a multiple of 128 — no padded output / post-slice now).
    n2, b2, d2 = 5, 3, 96
    occ2 = jax.random.normal(k2_occ, (n2, b2), dtype=jnp.float32)
    base2 = jax.random.normal(k2_base, (d2,), dtype=jnp.float32)
    out2 = jax.block_until_ready(generic_occupation_encoding(occ2, base2))
    ref2 = occ2[:, :, None] * base2[None, None, :]
    assert out2.shape == (n2, b2, d2)
    assert jnp.allclose(out2, ref2, atol=1e-6, rtol=1e-6)

    print("KERNEL_OK")
</pallas_src>

<mosaic_0001>
module attributes {stable_mosaic.version = 11 : i64} {
  func.func @_occ_encode_kernel(%arg0: i32, %arg1: i32, %arg2: memref<16x1xf32, #tpu.memory_space<vmem>>, %arg3: memref<1x128xf32, #tpu.memory_space<vmem>>, %arg4: memref<16x128xf32, #tpu.memory_space<vmem>>) attributes {dimension_semantics = [#tpu.dimension_semantics<parallel>, #tpu.dimension_semantics<parallel>], iteration_bounds = array<i64: 1, 1>, scalar_prefetch = 0 : i64, scratch_operands = 0 : i64, tpu.core_type = #tpu.core_type<tc>, window_params = [{transform_indices = @transform_0, window_bounds = array<i64: 16, 1>}, {transform_indices = @transform_1, window_bounds = array<i64: 1, 128>}, {transform_indices = @transform_2, window_bounds = array<i64: 16, 128>}]} {
    %c0 = arith.constant 0 : index
    %c0_0 = arith.constant 0 : index
    %0 = vector.load %arg2[%c0, %c0_0] : memref<16x1xf32, #tpu.memory_space<vmem>>, vector<16x1xf32>
    %c0_1 = arith.constant 0 : index
    %c0_2 = arith.constant 0 : index
    %1 = vector.load %arg3[%c0_1, %c0_2] : memref<1x128xf32, #tpu.memory_space<vmem>>, vector<1x128xf32>
    %2 = vector.broadcast %0 : vector<16x1xf32> to vector<16x128xf32>
    %3 = vector.broadcast %1 : vector<1x128xf32> to vector<16x128xf32>
    %4 = arith.mulf %2, %3 : vector<16x128xf32>
    %c0_3 = arith.constant 0 : index
    %c0_4 = arith.constant 0 : index
    %5 = vector.load %arg4[%c0_3, %c0_4] : memref<16x128xf32, #tpu.memory_space<vmem>>, vector<16x128xf32>
    tpu.vector_store %arg4[%c0_3, %c0_4], %4 {strides = array<i32>} : memref<16x128xf32, #tpu.memory_space<vmem>>, vector<16x128xf32>,
    return
  }
  func.func @transform_0(%arg0: i32, %arg1: i32) -> (i32, i32) {
    %c0_i32 = arith.constant 0 : i32
    %c0_i32_0 = arith.constant 0 : i32
    return %arg0, %c0_i32 : i32, i32
  }
  func.func @transform_1(%arg0: i32, %arg1: i32) -> (i32, i32) {
    %c0_i32 = arith.constant 0 : i32
    %c0_i32_0 = arith.constant 0 : i32
    return %c0_i32, %arg1 : i32, i32
  }
  func.func @transform_2(%arg0: i32, %arg1: i32) -> (i32, i32) {
    %c0_i32 = arith.constant 0 : i32
    return %arg0, %arg1 : i32, i32
  }
}

</mosaic_0001>

<bundles_post_ra>
// kernel: tpu_custom_call.1
= control target key start
LH: loop header
LB: loop body
LE: loop exit
PB: predicated region body
PF: predicated region fallthrough
CT: control target
= control target key end

     0   :  { %v79_v1 = vmov 0   ;;  %s110_s0 = inlined_call_operand.vmem [shape: f32[16,1], index: 0, kind: input, shape index: {}]   ;;  %s111_s1 = inlined_call_operand.vmem [shape: f32[1,128], index: 1, kind: input, shape index: {}]   ;;  %s112_s2 = inlined_call_operand.hbm [shape: f32[16,128], index: 2, kind: output, shape index: {}]  }
   0x1   :  { %v12_v0 = vld [vmem:[%s110_s0] sm:$0xff]  ;;  %56 = vset.pattern.permute.xlu0 %v79_v1 }
   0x2   :  { %7 = vsyncpa [#allocation3], 0  ;;  %17 = vperm.xlu0 %56, %v12_v0   ;;  %v13_v2 = vld [vmem:[%s110_s0 + $0x8] sm:$0xff]  ;;  %v51_v3 = vld [vmem:[%s111_s1] ss:$0 sm:$0xff]  ;;  %s80_s15 = smov [#allocation2]  }
   0x3   :  { %s40_s16 = sshll.u32 %s80_s15, 4  ;;  %s41_s16 = int_to_ptr.vmem [resolvable:$true] %s40_s16 }
   0x4   :  { %s57_s17 = scalar_lea.vmem %s41_s16, 256  ;;  %p62_p1 = scmp.lt.s32.totalorder %s41_s16, %s41_s16 }
   0x5   :  { %p58_p0 = scmp.ne.s32.totalorder %s41_s16, %s57_s17  ;;  %p63_p2 = scmp.lt.s32.totalorder %s57_s17, %s57_s17 }
   0x6   :  { %22 = vperm.xlu0 %56, %v13_v2  }
   0x7   :  { %p64_p3 = por %p63_p2, %p62_p1 }
   0x9   :  { %p65_p4 = pnand %p64_p3, %p58_p0 }
  0x7d   :  { %v18_v4 = vpop.permute.xlu0 %17 }
  0x7e   :  { %v31_v5 = vmul.f32 %v51_v3, %v18_v4 }
  0x80   :  { %33 = vst [vmem:[#allocation2] sm:$0xff] %v31_v5 }
  0x81   :  { %v23_v6 = vpop.permute.xlu0 %22 }
  0x82   :  { %v32_v7 = vmul.f32 %v51_v3, %v23_v6 }
  0x84   :  { %34 = vst [vmem:[#allocation2 + $0x8] sm:$0xff] %v32_v7 }
  0x85   :  { %68 = shalt.err (!%p65_p4)
}
  0x86   :  { %s81_s0 = smov 128   ;;  %s82_s18 = smov 8  }
  0x87   :  { %46 = dma.vmem_to_hbm [thread:$0]  %s41_s16, 256, %s112_s2, [#allocation3], %s81_s0, %s81_s0, %s82_s18  }
  0x88   :  { %77 = dma.done.wait [#allocation3], 256  }
  0x89   :  { %78 = vsyncadd [#allocation3], 4294967040 }
  0x8a   :  { %50 = vsyncpa [#allocation3], 1 }

</bundles_post_ra>
